<compile_context>
chip_gen: v6e
topology: v6e:2x2x1
jax: 0.10.0
libtpu: 0.0.40
codegen_flags: <defaults>
</compile_context>

<pallas_src>
import functools

import jax
import jax.numpy as jnp
from jax.experimental import pallas as pl
from jax.experimental.pallas import tpu as pltpu

LANE = 128        # TPU lane width (last-dim quantum)
SUBLANE = 8       # f32 sublane quantum
NEG_FILL = -1e30  # bias fill for padded action columns -> exactly zero probability


def _round_up(x, m):
    return (x + m - 1) // m * m


# --------------------------------------------------------------------------- #
# Kernel
# --------------------------------------------------------------------------- #
def policy_mlp_kernel(x_ref, w1_ref, b1_ref, w2_ref, b2_ref, w3_ref, b3_ref,
                      o_ref, *, exact_softmax):
    """One (tb, state_dim) batch tile through the whole MLP + stable softmax.

    Weights may be f32 or bf16; MXU accumulation is always f32.
    """
    cd = w1_ref.dtype
    # Cast the state in VMEM (free; avoids a wrapper-side pass over the input).
    x = x_ref[...].astype(cd)
    # Hoist bias loads once per tile (broadcast_in_dim is not CSE'd by JAX).
    b1 = b1_ref[...]
    b2 = b2_ref[...]
    b3 = b3_ref[...]

    h = jnp.dot(x, w1_ref[...], preferred_element_type=jnp.float32) + b1
    h = jnp.maximum(h.astype(cd), 0.0)        # ReLU at compute width

    h = jnp.dot(h, w2_ref[...], preferred_element_type=jnp.float32) + b2
    h = jnp.maximum(h.astype(cd), 0.0)

    logits = jnp.dot(h, w3_ref[...], preferred_element_type=jnp.float32) + b3

    # Numerically stable softmax over the lane-dense (padded) action dim.
    # Padded columns carry a -1e30 bias -> exp() == 0 -> zero probability.
    m = jnp.max(logits, axis=-1, keepdims=True)
    e = jnp.exp(logits - m)
    denom = jnp.sum(e, axis=-1, keepdims=True)
    if exact_softmax:
        probs = e / denom
    else:
        # approx=True -> EUP vrcp (otherwise-idle slot) instead of a VALU divide.
        probs = e * pl.reciprocal(denom, approx=True)
    o_ref[...] = probs.astype(o_ref.dtype)


# --------------------------------------------------------------------------- #
# One-time parameter preparation (hoisted out of the forward path)
# --------------------------------------------------------------------------- #
def prepare_policy_params(params, *, compute_dtype=jnp.float32):
    """Pad/cast PyTorch-style params ONCE into the kernel layout.

    Weights are stored (in, out) so the kernel runs y = x @ W + b on the MXU;
    hidden/action dims are zero-padded to multiples of 128 so every matmul
    N-dim and the output slab are lane-dense.  The final bias pad is -1e30 so
    padded action logits vanish after the softmax.  Biases stay f32.
    Returns (padded_param_dict, action_dim).
    """
    state_dim, h1 = params["w1"].shape
    h2 = params["w2"].shape[1]
    a = params["w3"].shape[1]
    h1p, h2p, ap = _round_up(h1, LANE), _round_up(h2, LANE), _round_up(a, LANE)

    w1 = jnp.zeros((state_dim, h1p), compute_dtype).at[:, :h1].set(
        params["w1"].astype(compute_dtype))
    b1 = jnp.zeros((1, h1p), jnp.float32).at[:, :h1].set(params["b1"])
    w2 = jnp.zeros((h1p, h2p), compute_dtype).at[:h1, :h2].set(
        params["w2"].astype(compute_dtype))
    b2 = jnp.zeros((1, h2p), jnp.float32).at[:, :h2].set(params["b2"])
    w3 = jnp.zeros((h2p, ap), compute_dtype).at[:h2, :a].set(
        params["w3"].astype(compute_dtype))
    b3 = jnp.full((1, ap), NEG_FILL, jnp.float32).at[:, :a].set(params["b3"])

    padded = {"w1": w1, "b1": b1, "w2": w2, "b2": b2, "w3": w3, "b3": b3}
    return jax.block_until_ready(padded), a


def _choose_tb(batch, max_tile):
    """Batch tile size: one tile for the whole batch when it fits (block ==
    full dim is always legal); otherwise split into an EVEN number of tiles
    (multiple-of-8 rows) so the grid balances across v7x's two TensorCores."""
    if batch <= max_tile:
        return batch
    n = 2
    while True:
        tb = _round_up(pl.cdiv(batch, n), SUBLANE)
        if tb <= max_tile:
            return tb
        n += 2


# --------------------------------------------------------------------------- #
# Forward wrapper
# --------------------------------------------------------------------------- #
@functools.partial(
    jax.jit,
    static_argnames=("action_dim", "out_dtype", "max_tile", "exact_softmax"))
def policy_network_forward(state, padded, *, action_dim,
                           out_dtype=jnp.float32, max_tile=2048,
                           exact_softmax=False):
    """state: (B, state_dim) f32.  padded: output of prepare_policy_params.

    Returns (B, action_dim) action probabilities in `out_dtype`.
    max_tile caps the rows per grid step (2048 fits every chip's scoped-VMEM
    default with headroom); on v7x one may lower it to ~cdiv(B, 2) rounded up
    to split a medium batch across both TensorCores.
    """
    B, state_dim = state.shape
    h1p = padded["w1"].shape[1]
    h2p = padded["w2"].shape[1]
    ap = padded["w3"].shape[1]

    tb = _choose_tb(B, max_tile)
    grid = (pl.cdiv(B, tb),)

    def resident(shape):
        # Constant index_map -> whole array stays VMEM-resident across the grid.
        return pl.BlockSpec(shape, lambda i: (0, 0))

    weight_bytes = sum(int(v.size) * v.dtype.itemsize for v in padded.values())
    cost = pl.CostEstimate(
        flops=2 * B * (state_dim * h1p + h1p * h2p + h2p * ap),
        transcendentals=B * (ap + 1),
        bytes_accessed=(B * state_dim * state.dtype.itemsize
                        + B * ap * jnp.dtype(out_dtype).itemsize
                        + weight_bytes),
    )

    kernel = functools.partial(policy_mlp_kernel, exact_softmax=exact_softmax)

    out = pl.pallas_call(
        kernel,
        out_shape=jax.ShapeDtypeStruct((B, ap), out_dtype),
        grid=grid,
        in_specs=[
            pl.BlockSpec((tb, state_dim), lambda i: (i, 0)),  # batch tiles
            resident((state_dim, h1p)), resident((1, h1p)),
            resident((h1p, h2p)), resident((1, h2p)),
            resident((h2p, ap)), resident((1, ap)),
        ],
        out_specs=pl.BlockSpec((tb, ap), lambda i: (i, 0)),   # lane-dense output
        compiler_params=pltpu.CompilerParams(
            dimension_semantics=("parallel",),  # batch tiles shard across TCs
            vmem_limit_bytes=32 * 1024 * 1024,
        ),
        cost_estimate=cost,
    )(state, padded["w1"], padded["b1"], padded["w2"], padded["b2"],
      padded["w3"], padded["b3"])

    return out[:, :action_dim]


# --------------------------------------------------------------------------- #
# Init + pure-JAX reference
# --------------------------------------------------------------------------- #
def init_params(key, state_dim, action_dim, hidden_layers):
    """Deterministic init mimicking nn.Linear's uniform(-1/sqrt(fan_in), ...)."""
    dims = [state_dim] + list(hidden_layers) + [action_dim]
    params = {}
    for i in range(len(dims) - 1):
        fan_in, fan_out = dims[i], dims[i + 1]
        key, kw, kb = jax.random.split(key, 3)
        bound = 1.0 / jnp.sqrt(jnp.float32(fan_in))
        # stored as (in, out) so the kernel can do x @ W directly
        params[f"w{i + 1}"] = jax.random.uniform(
            kw, (fan_in, fan_out), jnp.float32, -bound, bound)
        params[f"b{i + 1}"] = jax.random.uniform(
            kb, (1, fan_out), jnp.float32, -bound, bound)
    return params


def reference_forward(state, params):
    h = jnp.maximum(state @ params["w1"] + params["b1"], 0.0)
    h = jnp.maximum(h @ params["w2"] + params["b2"], 0.0)
    logits = h @ params["w3"] + params["b3"]
    return jax.nn.softmax(logits, axis=-1)


if __name__ == "__main__":
    state_dim, action_dim, hidden_layers = 16, 8, [32, 32]

    key = jax.random.PRNGKey(0)
    key, kx_small, kx_big = jax.random.split(key, 3)
    params = init_params(key, state_dim, action_dim, hidden_layers)

    # One-time pad/cast (hoisted out of the forward path).
    padded_f32, A = prepare_policy_params(params, compute_dtype=jnp.float32)
    padded_bf16, _ = prepare_policy_params(params, compute_dtype=jnp.bfloat16)

    # 1) Small RL-style batch -- single tile, block == full batch dim.
    s_small = jax.random.normal(kx_small, (2, state_dim), jnp.float32)
    p_small = jax.block_until_ready(
        policy_network_forward(s_small, padded_f32, action_dim=A))
    r_small = reference_forward(s_small, params)
    assert p_small.shape == (2, action_dim)
    assert float(jnp.max(jnp.abs(p_small - r_small))) < 1e-2
    assert float(jnp.max(jnp.abs(jnp.sum(p_small, axis=-1) - 1.0))) < 1e-2

    # 2) Rollout-sized batch -- whole 260-row batch as ONE tile, no batch copy.
    s_big = jax.random.normal(kx_big, (260, state_dim), jnp.float32)
    p_big = jax.block_until_ready(
        policy_network_forward(s_big, padded_f32, action_dim=A))
    r_big = reference_forward(s_big, params)
    assert p_big.shape == (260, action_dim)
    assert float(jnp.max(jnp.abs(p_big - r_big))) < 1e-2
    assert float(jnp.max(jnp.abs(jnp.sum(p_big, axis=-1) - 1.0))) < 1e-2

    # 3) Exact softmax divide (for log-prob / entropy consumers).
    p_exact = jax.block_until_ready(
        policy_network_forward(s_big, padded_f32, action_dim=A,
                               exact_softmax=True))
    assert float(jnp.max(jnp.abs(p_exact - r_big))) < 5e-3

    # 4) Multi-tile path: even grid + ragged last tile (v7x-style split).
    p_split = jax.block_until_ready(
        policy_network_forward(s_big, padded_f32, action_dim=A, max_tile=128))
    assert float(jnp.max(jnp.abs(p_split - r_big))) < 1e-2

    # 5) bf16 compute + bf16 output (halves HBM writeback on v6e/v7x).
    p_bf16 = jax.block_until_ready(
        policy_network_forward(s_big, padded_bf16, action_dim=A,
                               out_dtype=jnp.bfloat16))
    assert p_bf16.shape == (260, action_dim)
    assert p_bf16.dtype == jnp.bfloat16
    assert float(jnp.max(jnp.abs(p_bf16.astype(jnp.float32) - r_big))) < 8e-2

    print("KERNEL_OK")
</pallas_src>

<mosaic_0001>
module attributes {stable_mosaic.version = 11 : i64} {
  func.func @policy_mlp_kernel(%arg0: i32, %arg1: memref<2x16xf32, #tpu.memory_space<vmem>>, %arg2: memref<16x128xf32, #tpu.memory_space<vmem>>, %arg3: memref<1x128xf32, #tpu.memory_space<vmem>>, %arg4: memref<128x128xf32, #tpu.memory_space<vmem>>, %arg5: memref<1x128xf32, #tpu.memory_space<vmem>>, %arg6: memref<128x128xf32, #tpu.memory_space<vmem>>, %arg7: memref<1x128xf32, #tpu.memory_space<vmem>>, %arg8: memref<2x128xf32, #tpu.memory_space<vmem>>) attributes {dimension_semantics = [#tpu.dimension_semantics<parallel>], iteration_bounds = array<i64: 1>, scalar_prefetch = 0 : i64, scratch_operands = 0 : i64, tpu.core_type = #tpu.core_type<tc>, window_params = [{transform_indices = @transform_0, window_bounds = array<i64: 2, 16>}, {pipeline_mode = #tpu.pipeline_mode<synchronous>, transform_indices = @transform_1, window_bounds = array<i64: 16, 128>}, {pipeline_mode = #tpu.pipeline_mode<synchronous>, transform_indices = @transform_2, window_bounds = array<i64: 1, 128>}, {pipeline_mode = #tpu.pipeline_mode<synchronous>, transform_indices = @transform_3, window_bounds = array<i64: 128, 128>}, {pipeline_mode = #tpu.pipeline_mode<synchronous>, transform_indices = @transform_4, window_bounds = array<i64: 1, 128>}, {pipeline_mode = #tpu.pipeline_mode<synchronous>, transform_indices = @transform_5, window_bounds = array<i64: 128, 128>}, {pipeline_mode = #tpu.pipeline_mode<synchronous>, transform_indices = @transform_6, window_bounds = array<i64: 1, 128>}, {transform_indices = @transform_7, window_bounds = array<i64: 2, 128>}]} {
    %c0 = arith.constant 0 : index
    %c0_0 = arith.constant 0 : index
    %0 = vector.load %arg1[%c0, %c0_0] : memref<2x16xf32, #tpu.memory_space<vmem>>, vector<2x16xf32>
    %c0_1 = arith.constant 0 : index
    %c0_2 = arith.constant 0 : index
    %1 = vector.load %arg3[%c0_1, %c0_2] : memref<1x128xf32, #tpu.memory_space<vmem>>, vector<1x128xf32>
    %c0_3 = arith.constant 0 : index
    %c0_4 = arith.constant 0 : index
    %2 = vector.load %arg5[%c0_3, %c0_4] : memref<1x128xf32, #tpu.memory_space<vmem>>, vector<1x128xf32>
    %c0_5 = arith.constant 0 : index
    %c0_6 = arith.constant 0 : index
    %3 = vector.load %arg7[%c0_5, %c0_6] : memref<1x128xf32, #tpu.memory_space<vmem>>, vector<1x128xf32>
    %c0_7 = arith.constant 0 : index
    %c0_8 = arith.constant 0 : index
    %4 = vector.load %arg2[%c0_7, %c0_8] : memref<16x128xf32, #tpu.memory_space<vmem>>, vector<16x128xf32>
    %cst = arith.constant dense<0.000000e+00> : vector<2x128xf32>
    %5 = tpu.matmul %0, %4, %cst {dimension_numbers = #tpu.dot_dimension_numbers<[1], [0], [0], [1], [0, 0, 1, 1], [], []>} : vector<2x16xf32>, vector<16x128xf32>, vector<2x128xf32> -> vector<2x128xf32>
    %6 = vector.broadcast %1 : vector<1x128xf32> to vector<2x128xf32>
    %7 = arith.addf %5, %6 : vector<2x128xf32>
    %cst_9 = arith.constant 0.000000e+00 : f32
    %8 = vector.broadcast %cst_9 : f32 to vector<2x128xf32>
    %9 = arith.maximumf %7, %8 : vector<2x128xf32>
    %c0_10 = arith.constant 0 : index
    %c0_11 = arith.constant 0 : index
    %10 = vector.load %arg4[%c0_10, %c0_11] : memref<128x128xf32, #tpu.memory_space<vmem>>, vector<128x128xf32>
    %cst_12 = arith.constant dense<0.000000e+00> : vector<2x128xf32>
    %11 = tpu.matmul %9, %10, %cst_12 {dimension_numbers = #tpu.dot_dimension_numbers<[1], [0], [0], [1], [0, 0, 1, 1], [], []>} : vector<2x128xf32>, vector<128x128xf32>, vector<2x128xf32> -> vector<2x128xf32>
    %12 = vector.broadcast %2 : vector<1x128xf32> to vector<2x128xf32>
    %13 = arith.addf %11, %12 : vector<2x128xf32>
    %cst_13 = arith.constant 0.000000e+00 : f32
    %14 = vector.broadcast %cst_13 : f32 to vector<2x128xf32>
    %15 = arith.maximumf %13, %14 : vector<2x128xf32>
    %c0_14 = arith.constant 0 : index
    %c0_15 = arith.constant 0 : index
    %16 = vector.load %arg6[%c0_14, %c0_15] : memref<128x128xf32, #tpu.memory_space<vmem>>, vector<128x128xf32>
    %cst_16 = arith.constant dense<0.000000e+00> : vector<2x128xf32>
    %17 = tpu.matmul %15, %16, %cst_16 {dimension_numbers = #tpu.dot_dimension_numbers<[1], [0], [0], [1], [0, 0, 1, 1], [], []>} : vector<2x128xf32>, vector<128x128xf32>, vector<2x128xf32> -> vector<2x128xf32>
    %18 = vector.broadcast %3 : vector<1x128xf32> to vector<2x128xf32>
    %19 = arith.addf %17, %18 : vector<2x128xf32>
    %cst_17 = arith.constant dense<0xFF800000> : vector<2xf32>
    %20 = vector.multi_reduction <maximumf>, %19, %cst_17 [1] : vector<2x128xf32> to vector<2xf32>
    %21 = vector.shape_cast %20 : vector<2xf32> to vector<2x1xf32>
    %22 = vector.broadcast %21 : vector<2x1xf32> to vector<2x128xf32>
    %23 = arith.subf %19, %22 : vector<2x128xf32>
    %24 = math.exp %23 : vector<2x128xf32>
    %cst_18 = arith.constant dense<0.000000e+00> : vector<2xf32>
    %25 = vector.multi_reduction <add>, %24, %cst_18 [1] : vector<2x128xf32> to vector<2xf32>
    %26 = vector.shape_cast %25 : vector<2xf32> to vector<2x1xf32>
    %27 = tpu.reciprocal %26 {approx = true} : vector<2x1xf32> -> vector<2x1xf32>
    %28 = vector.broadcast %27 : vector<2x1xf32> to vector<2x128xf32>
    %29 = arith.mulf %24, %28 : vector<2x128xf32>
    %c0_19 = arith.constant 0 : index
    %c0_20 = arith.constant 0 : index
    %30 = vector.load %arg8[%c0_19, %c0_20] : memref<2x128xf32, #tpu.memory_space<vmem>>, vector<2x128xf32>
    tpu.vector_store %arg8[%c0_19, %c0_20], %29 {strides = array<i32>} : memref<2x128xf32, #tpu.memory_space<vmem>>, vector<2x128xf32>,
    return
  }
  func.func @transform_0(%arg0: i32) -> (i32, i32) {
    %c0_i32 = arith.constant 0 : i32
    %c0_i32_0 = arith.constant 0 : i32
    return %arg0, %c0_i32 : i32, i32
  }
  func.func @transform_1(%arg0: i32) -> (i32, i32) {
    %c0_i32 = arith.constant 0 : i32
    %c0_i32_0 = arith.constant 0 : i32
    %c0_i32_1 = arith.constant 0 : i32
    return %c0_i32, %c0_i32_0 : i32, i32
  }
  func.func @transform_2(%arg0: i32) -> (i32, i32) {
    %c0_i32 = arith.constant 0 : i32
    %c0_i32_0 = arith.constant 0 : i32
    %c0_i32_1 = arith.constant 0 : i32
    return %c0_i32, %c0_i32_0 : i32, i32
  }
  func.func @transform_3(%arg0: i32) -> (i32, i32) {
    %c0_i32 = arith.constant 0 : i32
    %c0_i32_0 = arith.constant 0 : i32
    %c0_i32_1 = arith.constant 0 : i32
    return %c0_i32, %c0_i32_0 : i32, i32
  }
  func.func @transform_4(%arg0: i32) -> (i32, i32) {
    %c0_i32 = arith.constant 0 : i32
    %c0_i32_0 = arith.constant 0 : i32
    %c0_i32_1 = arith.constant 0 : i32
    return %c0_i32, %c0_i32_0 : i32, i32
  }
  func.func @transform_5(%arg0: i32) -> (i32, i32) {
    %c0_i32 = arith.constant 0 : i32
    %c0_i32_0 = arith.constant 0 : i32
    %c0_i32_1 = arith.constant 0 : i32
    return %c0_i32, %c0_i32_0 : i32, i32
  }
  func.func @transform_6(%arg0: i32) -> (i32, i32) {
    %c0_i32 = arith.constant 0 : i32
    %c0_i32_0 = arith.constant 0 : i32
    %c0_i32_1 = arith.constant 0 : i32
    return %c0_i32, %c0_i32_0 : i32, i32
  }
  func.func @transform_7(%arg0: i32) -> (i32, i32) {
    %c0_i32 = arith.constant 0 : i32
    %c0_i32_0 = arith.constant 0 : i32
    return %arg0, %c0_i32 : i32, i32
  }
}

</mosaic_0001>

<bundles_post_ra>
// kernel: policy_network_forward.1
= control target key start
LH: loop header
LB: loop body
LE: loop exit
PB: predicated region body
PF: predicated region fallthrough
CT: control target
= control target key end

     0   :  { %12 = vsyncpa [#allocation3], 0  ;;  %s743_s0 = inlined_call_operand.hbm [shape: f32[2,16], index: 0, kind: input, shape index: {}]   ;;  %s744_s1 = inlined_call_operand.hbm [shape: f32[16,128], index: 1, kind: input, shape index: {}]   ;;  %s745_s2 = inlined_call_operand.vmem [shape: f32[1,128], index: 2, kind: input, shape index: {}]   ;;  %s746_s3 = inlined_call_operand.hbm [shape: f32[128,128], index: 3, kind: input, shape index: {}]   ;;  %s747_s4 = inlined_call_operand.vmem [shape: f32[1,128], index: 4, kind: input, shape index: {}]   ;;  %s748_s5 = inlined_call_operand.hbm [shape: f32[128,128], index: 5, kind: input, shape index: {}]   ;;  %s749_s6 = inlined_call_operand.vmem [shape: f32[1,128], index: 6, kind: input, shape index: {}]   ;;  %s750_s7 = inlined_call_operand.hbm [shape: f32[2,128], index: 7, kind: output, shape index: {}]  }
   0x1   :  { %13 = vsyncpa [#allocation6], 0 }
   0x2   :  { %14 = vsyncpa [#allocation9], 0 }
   0x3   :  { %15 = vsyncpa [#allocation4], 0  ;;  %s621_s24 = smov [#allocation5]  }
   0x4   :  { %s31_s25 = sshll.u32 %s621_s24, 4  ;;  %s32_s25 = int_to_ptr.vmem [resolvable:$true] %s31_s25 }
   0x5   :  { %s521_s26 = scalar_lea.vmem %s32_s25, 256  ;;  %p526_p1 = scmp.lt.s32.totalorder %s32_s25, %s32_s25 }
   0x6   :  { %p522_p0 = scmp.ne.s32.totalorder %s32_s25, %s521_s26  ;;  %p527_p2 = scmp.lt.s32.totalorder %s521_s26, %s521_s26 }
   0x8   :  { %p528_p3 = por %p527_p2, %p526_p1 }
   0xa   :  { %p529_p4 = pnand %p528_p3, %p522_p0 }
   0xc   :  { %532 = shalt.err (!%p529_p4)
}
   0xd   :  { %s622_s27 = smov 128   ;;  %s623_s28 = smov 8  }
   0xe   :  { %37 = dma.hbm_to_vmem [thread:$0]  %s744_s1, 256, %s32_s25, [#allocation6], %s622_s27, %s622_s27, %s623_s28  }
   0xf   :  { %s624_s8 = smov [#allocation2]   ;;  %s625_s10 = smov [#allocation7]  }
  0x10   :  { %s22_s9 = sshll.u32 %s624_s8, 4  ;;  %s45_s11 = sshll.u32 %s625_s10, 4  ;;  %s23_s9 = int_to_ptr.vmem [resolvable:$true] %s22_s9  ;;  %s46_s11 = int_to_ptr.vmem [resolvable:$true] %s45_s11 }
  0x11   :  { %s541_s12 = scalar_lea.vmem %s23_s9, 32  ;;  %p546_p6 = scmp.lt.s32.totalorder %s23_s9, %s23_s9 }
  0x12   :  { %p542_p5 = scmp.ne.s32.totalorder %s23_s9, %s541_s12  ;;  %p547_p7 = scmp.lt.s32.totalorder %s541_s12, %s541_s12 }
  0x14   :  { %p548_p8 = por %p547_p7, %p546_p6 }
  0x16   :  { %p549_p9 = pnand %p548_p8, %p542_p5 }
  0x18   :  { %552 = shalt.err (!%p549_p9)
}
  0x19   :  { %25 = dma.hbm_to_vmem [thread:$0]  %s743_s0, 32, %s23_s9, [#allocation3]  }
  0x1a   :  { %s561_s15 = scalar_lea.vmem %s46_s11, 2048  ;;  %p566_p11 = scmp.lt.s32.totalorder %s46_s11, %s46_s11 }
  0x1b   :  { %p562_p10 = scmp.ne.s32.totalorder %s46_s11, %s561_s15  ;;  %p567_p12 = scmp.lt.s32.totalorder %s561_s15, %s561_s15 }
  0x1d   :  { %p568_p13 = por %p567_p12, %p566_p11 }
  0x1f   :  { %p569_p0 = pnand %p568_p13, %p562_p10 }
  0x21   :  { %572 = shalt.err (!%p569_p0)
}
  0x22   :  { %51 = dma.hbm_to_vmem [thread:$0]  %s746_s3, 2048, %s46_s11, [#allocation6], %s622_s27, %s622_s27, %s623_s28  }
  0x23   :  { %s626_s17 = smov [#allocation8]  }
  0x24   :  { %s59_s18 = sshll.u32 %s626_s17, 4  ;;  %s60_s18 = int_to_ptr.vmem [resolvable:$true] %s59_s18 }
  0x25   :  { %s581_s19 = scalar_lea.vmem %s60_s18, 2048  ;;  %p586_p2 = scmp.lt.s32.totalorder %s60_s18, %s60_s18 }
  0x26   :  { %p582_p1 = scmp.ne.s32.totalorder %s60_s18, %s581_s19  ;;  %p587_p3 = scmp.lt.s32.totalorder %s581_s19, %s581_s19 }
  0x28   :  { %p588_p4 = por %p587_p3, %p586_p2 }
  0x2a   :  { %p589_p5 = pnand %p588_p4, %p582_p1 }
  0x2c   :  { %592 = shalt.err (!%p589_p5)
}
  0x2d   :  { %65 = dma.hbm_to_vmem [thread:$0]  %s748_s5, 2048, %s60_s18, [#allocation9], %s622_s27, %s622_s27, %s623_s28  }
  0x2e   :  { %613 = dma.done.wait [#allocation3], 32  }
  0x2f   :  { %614 = vsyncadd [#allocation3], 4294967264 }
  0x30   :  { %615 = dma.done.wait [#allocation6], 2304  }
  0x31   :  { %616 = vsyncadd [#allocation6], 4294964992 }
  0x32   :  { %617 = dma.done.wait [#allocation9], 2048  }
  0x33   :  { %618 = vsyncadd [#allocation9], 4294965248  ;;  %v627_v0 = vmov 0.0   ;;  %vm628_vm0 = vmmov 0   ;;  %v85_v1 = vld [vmem:[#allocation5 + $0x8] sm:$0xff]  ;;  %v84_v2 = vld [vmem:[#allocation5] sm:$0xff] }
  0x34   :  { %423 = vmatprep.subr.mxu0 %v627_v0  ;;  %427 = vmatprep.mubr.msk.f32.mxu0 %vm628_vm0, %v627_v0  ;;  %v80_v3 = vld [vmem:[#allocation2] sm:$0x3]  ;;  %vm92_vm1 = vcmask 130048   ;;  %v182_v4 = vld [vmem:[#allocation7 + $0x78] sm:$0xff]  ;;  %v181_v5 = vld [vmem:[#allocation7 + $0x70] sm:$0xff]  ;;  %vm352_vm2 = vcmask 1041408  }
  0x35   :  { %430 = vmatprep.subr.mxu1 %v627_v0  ;;  %462 = vmatprep.mubr.msk.f32.mxu1 %vm628_vm0, %v627_v0  ;;  %v180_v6 = vld [vmem:[#allocation7 + $0x68] sm:$0xff]  ;;  %v179_v7 = vld [vmem:[#allocation7 + $0x60] sm:$0xff]  ;;  %v178_v8 = vld [vmem:[#allocation7 + $0x58] sm:$0xff] }
  0x36   :  { %424 = vmatpush3.msra.mxu0 %v85_v1  ;;  %431 = vmatpush3.msra.mxu1 %v182_v4  ;;  %v177_v9 = vld [vmem:[#allocation7 + $0x50] sm:$0xff]  ;;  %v176_v10 = vld [vmem:[#allocation7 + $0x48] sm:$0xff]  ;;  %v175_v11 = vld [vmem:[#allocation7 + $0x40] sm:$0xff] }
  0x37   :  { %425 = vmatprep.subr.mxu0 %v627_v0  ;;  %432 = vmatprep.subr.mxu1 %v627_v0  ;;  %v174_v12 = vld [vmem:[#allocation7 + $0x38] sm:$0xff]  ;;  %v173_v13 = vld [vmem:[#allocation7 + $0x30] sm:$0xff]  ;;  %v172_v14 = vld [vmem:[#allocation7 + $0x28] sm:$0xff] }
  0x38   :  { %426 = vmatpush3.msra.mxu0 %v84_v2  ;;  %433 = vmatpush3.msra.mxu1 %v181_v5  ;;  %v171_v15 = vld [vmem:[#allocation7 + $0x20] sm:$0xff]  ;;  %v170_v16 = vld [vmem:[#allocation7 + $0x18] sm:$0xff]  ;;  %v169_v17 = vld [vmem:[#allocation7 + $0x10] sm:$0xff] }
  0x39   :  { %428 = vmatmul.mubr.msk.f32.vlgmr.msra.gmra.mxu0 %vm92_vm1, %v80_v3  ;;  %434 = vmatprep.subr.mxu1 %v627_v0  ;;  %v168_v18 = vld [vmem:[#allocation7 + $0x8] sm:$0xff]  ;;  %v167_v19 = vld [vmem:[#allocation7] sm:$0xff]  ;;  %v275_v20 = vld [vmem:[#allocation8 + $0x78] sm:$0xff] }
  0x3a   :  { %465 = vmatprep.subr.mxu0 %v627_v0  ;;  %435 = vmatpush3.msra.mxu1 %v180_v6  ;;  %v274_v21 = vld [vmem:[#allocation8 + $0x70] sm:$0xff]  ;;  %v273_v22 = vld [vmem:[#allocation8 + $0x68] sm:$0xff]  ;;  %v272_v23 = vld [vmem:[#allocation8 + $0x60] sm:$0xff] }
  0x3b   :  { %497 = vmatprep.mubr.msk.f32.mxu0 %vm628_vm0, %v627_v0  ;;  %436 = vmatprep.subr.mxu1 %v627_v0  ;;  %v271_v24 = vld [vmem:[#allocation8 + $0x58] sm:$0xff]  ;;  %v270_v25 = vld [vmem:[#allocation8 + $0x50] sm:$0xff]  ;;  %v269_v26 = vld [vmem:[#allocation8 + $0x48] sm:$0xff] }
  0x3c   :  { %437 = vmatpush3.msra.mxu1 %v179_v7  ;;  %466 = vmatpush3.msra.mxu0 %v275_v20  ;;  %v268_v27 = vld [vmem:[#allocation8 + $0x40] sm:$0xff]  ;;  %v267_v28 = vld [vmem:[#allocation8 + $0x38] sm:$0xff]  ;;  %v266_v29 = vld [vmem:[#allocation8 + $0x30] sm:$0xff] }
  0x3d   :  { %438 = vmatprep.subr.mxu1 %v627_v0  ;;  %467 = vmatprep.subr.mxu0 %v627_v0  ;;  %v265_v30 = vld [vmem:[#allocation8 + $0x28] sm:$0xff]  ;;  %v264_v31 = vld [vmem:[#allocation8 + $0x20] sm:$0xff]  ;;  %v263_v32 = vld [vmem:[#allocation8 + $0x18] sm:$0xff] }
  0x3e   :  { %439 = vmatpush3.msra.mxu1 %v178_v8  ;;  %468 = vmatpush3.msra.mxu0 %v274_v21  ;;  %v382_v33 = vld [vmem:[%s745_s2] ss:$0 sm:$0xff]  ;;  %v262_v38 = vld [vmem:[#allocation8 + $0x10] sm:$0xff]  ;;  %v260_v40 = vld [vmem:[#allocation8] sm:$0xff] }
  0x3f   :  { %440 = vmatprep.subr.mxu1 %v627_v0  ;;  %469 = vmatprep.subr.mxu0 %v627_v0  ;;  %v261_v39 = vld [vmem:[#allocation8 + $0x8] sm:$0xff] }
  0x40   :  { %441 = vmatpush3.msra.mxu1 %v177_v9  ;;  %470 = vmatpush3.msra.mxu0 %v273_v22  ;;  %v384_v41 = vld [vmem:[%s747_s4] ss:$0 sm:$0xff]  ;;  %s629_s4 = smov [#allocation10]  }
  0x41   :  { %442 = vmatprep.subr.mxu1 %v627_v0  ;;  %471 = vmatprep.subr.mxu0 %v627_v0  ;;  %v385_v46 = vld [vmem:[%s749_s6] ss:$0 sm:$0xff]  ;;  %s371_s24 = sshll.u32 %s629_s4, 4  ;;  %s372_s24 = int_to_ptr.vmem [resolvable:$true] %s371_s24 }
  0x42   :  { %443 = vmatpush3.msra.mxu1 %v176_v10  ;;  %472 = vmatpush3.msra.mxu0 %v272_v23  ;;  %s593_s6 = scalar_lea.vmem %s372_s24, 32  ;;  %p598_p7 = scmp.lt.s32.totalorder %s372_s24, %s372_s24 }
  0x43   :  { %444 = vmatprep.subr.mxu1 %v627_v0  ;;  %473 = vmatprep.subr.mxu0 %v627_v0  ;;  %p594_p6 = scmp.ne.s32.totalorder %s372_s24, %s593_s6  ;;  %p599_p8 = scmp.lt.s32.totalorder %s593_s6, %s593_s6 }
  0x44   :  { %445 = vmatpush3.msra.mxu1 %v175_v11  ;;  %474 = vmatpush3.msra.mxu0 %v271_v24 }
  0x45   :  { %446 = vmatprep.subr.mxu1 %v627_v0  ;;  %475 = vmatprep.subr.mxu0 %v627_v0  ;;  %p600_p9 = por %p599_p8, %p598_p7 }
  0x46   :  { %447 = vmatpush3.msra.mxu1 %v174_v12  ;;  %476 = vmatpush3.msra.mxu0 %v270_v25 }
  0x47   :  { %448 = vmatprep.subr.mxu1 %v627_v0  ;;  %477 = vmatprep.subr.mxu0 %v627_v0  ;;  %p601_p10 = pnand %p600_p9, %p594_p6 }
  0x48   :  { %449 = vmatpush3.msra.mxu1 %v173_v13  ;;  %478 = vmatpush3.msra.mxu0 %v269_v26 }
  0x49   :  { %450 = vmatprep.subr.mxu1 %v627_v0  ;;  %479 = vmatprep.subr.mxu0 %v627_v0 }
  0x4a   :  { %451 = vmatpush3.msra.mxu1 %v172_v14  ;;  %480 = vmatpush3.msra.mxu0 %v268_v27 }
  0x4b   :  { %452 = vmatprep.subr.mxu1 %v627_v0  ;;  %481 = vmatprep.subr.mxu0 %v627_v0 }
  0x4c   :  { %453 = vmatpush3.msra.mxu1 %v171_v15  ;;  %482 = vmatpush3.msra.mxu0 %v267_v28 }
  0x4d   :  { %454 = vmatprep.subr.mxu1 %v627_v0  ;;  %483 = vmatprep.subr.mxu0 %v627_v0 }
  0x4e   :  { %455 = vmatpush3.msra.mxu1 %v170_v16  ;;  %484 = vmatpush3.msra.mxu0 %v266_v29 }
  0x4f   :  { %456 = vmatprep.subr.mxu1 %v627_v0  ;;  %485 = vmatprep.subr.mxu0 %v627_v0 }
  0x50   :  { %457 = vmatpush3.msra.mxu1 %v169_v17  ;;  %486 = vmatpush3.msra.mxu0 %v265_v30 }
  0x51   :  { %458 = vmatprep.subr.mxu1 %v627_v0  ;;  %487 = vmatprep.subr.mxu0 %v627_v0 }
  0x52   :  { %459 = vmatpush3.msra.mxu1 %v168_v18  ;;  %488 = vmatpush3.msra.mxu0 %v264_v31 }
  0x53   :  { %460 = vmatprep.subr.mxu1 %v627_v0  ;;  %489 = vmatprep.subr.mxu0 %v627_v0 }
  0x54   :  { %461 = vmatpush3.msra.mxu1 %v167_v19  ;;  %490 = vmatpush3.msra.mxu0 %v263_v32 }
  0x55   :  { %491 = vmatprep.subr.mxu0 %v627_v0 }
  0x56   :  { %492 = vmatpush3.msra.mxu0 %v262_v38 }
  0x57   :  { %493 = vmatprep.subr.mxu0 %v627_v0 }
  0x58   :  { %494 = vmatpush3.msra.mxu0 %v261_v39 }
  0x59   :  { %495 = vmatprep.subr.mxu0 %v627_v0 }
  0x5a   :  { %496 = vmatpush3.msra.mxu0 %v260_v40 }
  0xf9   :  { %v162_v34 = vpop.f32.mrf.mxu0 }
  0xfa   :  { %v163_v35 = vadd.f32 %v382_v33, %v162_v34 }
  0xfb   :  { %v429_v36 = vpop.f32.mrf.mxu0 }
  0xfc   :  { %v166_v37 = vmax.f32 %v163_v35, 0.0 }
  0xfe   :  { %463 = vmatmul.mubr.f32.vlgmr.msra.gmra.mxu1 %v166_v37 }
 0x1be   :  { %v255_v42 = vpop.f32.mrf.mxu1 }
 0x1bf   :  { %v256_v43 = vadd.f32 %v384_v41, %v255_v42 }
 0x1c0   :  { %v464_v44 = vpop.f32.mrf.mxu1 }
 0x1c1   :  { %v259_v45 = vmax.f32 %v256_v43, 0.0 }
 0x1c3   :  { %498 = vmatmul.mubr.f32.vlgmr.msra.gmra.mxu0 %v259_v45 }
 0x283   :  { %v348_v47 = vpop.f32.mrf.mxu0 }
 0x284   :  { %v349_v48 = vadd.f32 %v385_v46, %v348_v47 }
 0x285   :  { %v499_v49 = vpop.f32.mrf.mxu0 }
 0x286   :  { %v353_v50 = vsel %vm352_vm2, %v349_v48, -inf }
 0x287   :  { %354 = vmax.xlane.f32.xlu0 %v353_v50 }
 0x310   :  { %v355_v51 = vpop.xlane.xlu0 %354 }
 0x311   :  { %v356_v52 = vsub.f32 %v349_v48, %v355_v51 }
 0x313   :  { %v357_v53 = vmul.f32 1.442695, %v356_v52 }
 0x315   :  { %509 = vpow2.f32 %v357_v53 }
 0x322   :  { %v510_v54 = vpop.eup %509 }
 0x323   :  { %v359_v55 = vsel %vm352_vm2, %v510_v54, 0.0 }
 0x324   :  { %360 = vadd.xlane.f32.xlu0 %v359_v55 }
 0x3ad   :  { %v361_v56 = vpop.xlane.xlu0 %360 }
 0x3ae   :  { %511 = vrcp.f32 %v361_v56 }
 0x3bb   :  { %v512_v57 = vpop.eup %511 }
 0x3bc   :  { %v363_v58 = vmul.f32 %v512_v57, %v510_v54 }
 0x3be   :  { %364 = vst [vmem:[#allocation10] sm:$0x3] %v363_v58 }
 0x3bf   :  { %604 = shalt.err (!%p601_p10)
}
 0x3c0   :  { %374 = dma.vmem_to_hbm [thread:$0]  %s372_s24, 32, %s750_s7, [#allocation4]  }
 0x3c1   :  { %619 = dma.done.wait [#allocation4], 32  }
 0x3c2   :  { %620 = vsyncadd [#allocation4], 4294967264 }
 0x3c3   :  { %378 = vsyncpa [#allocation3], 1 }
 0x3c4   :  { %379 = vsyncpa [#allocation6], 1 }
 0x3c5   :  { %380 = vsyncpa [#allocation9], 1 }
 0x3c6   :  { %381 = vsyncpa [#allocation4], 1 }

</bundles_post_ra>
